<compile_context>
chip_gen: v5e
topology: v5e:2x2
jax: 0.10.0
libtpu: 0.0.40
codegen_flags: <defaults>
</compile_context>

<pallas_src>
import jax
import jax.numpy as jnp
from jax.experimental import pallas as pl
from jax.experimental.pallas import tpu as pltpu


def _copy_kernel(x_ref, o_ref):
    # Identical input/output windows: plain tile copy, no in-kernel slicing.
    o_ref[...] = x_ref[...]


def _slice_kernel(x_ref, o_ref):
    # Small-shape fallback: full (rows, T) slab in, first T_out columns out.
    t_out = o_ref.shape[-1]
    o_ref[...] = x_ref[:, :t_out]


_LANE = 128
_SUBLANE = 8
_MAX_T_TILE = 8192                   # prefer wide time tiles (long HBM bursts)
_MAX_BLOCK_BYTES = 3 * 1024 * 1024   # per buffer; x4 (in+out, double-buffered)
_VMEM_LIMIT_BYTES = 32 * 1024 * 1024


def _sublane_multiple(dtype) -> int:
    itemsize = jnp.dtype(dtype).itemsize
    return max(_SUBLANE, 32 // itemsize)


def _row_tile(n_rows: int, t_tile: int, dtype) -> int:
    """Largest sublane-aligned row tile that keeps one block <= budget."""
    itemsize = jnp.dtype(dtype).itemsize
    sub = _sublane_multiple(dtype)
    cap = max(sub, (_MAX_BLOCK_BYTES // (t_tile * itemsize)) // sub * sub)
    return n_rows if n_rows <= cap else cap


def chop1d(x: jax.Array, chop_size: int) -> jax.Array:
    """Pallas equivalent of _Chop1d.forward: x[..., :-chop_size]."""
    assert chop_size > 0, "chop_size must be positive (matches x[..., :-chop])"
    B, C, T = x.shape
    T_out = T - chop_size
    assert T_out > 0, "chop_size must be smaller than the time dimension"

    itemsize = jnp.dtype(x.dtype).itemsize
    R = B * C
    x2 = x.reshape(R, T)  # free view: (B, C, T) is row-major contiguous

    if T_out >= _LANE:
        # --- Tiled fast path: identical in/out blocks, lane-dense copies. ---
        # Time tile: as wide as possible (<= _MAX_T_TILE), then rebalanced so
        # the last tile is not a sliver (keeps stores lane-dense).
        t_max = min(_MAX_T_TILE, (T_out // _LANE) * _LANE)
        n_t = pl.cdiv(T_out, t_max)
        t_tile = min(t_max, _LANE * pl.cdiv(pl.cdiv(T_out, n_t), _LANE))
        r_tile = _row_tile(R, t_tile, x.dtype)

        grid = (pl.cdiv(R, r_tile), pl.cdiv(T_out, t_tile))
        block = (r_tile, t_tile)
        idx = lambda r, t: (r, t)  # chop starts at offset 0 -> same map

        out2 = pl.pallas_call(
            _copy_kernel,
            out_shape=jax.ShapeDtypeStruct((R, T_out), x.dtype),
            grid_spec=pltpu.PrefetchScalarGridSpec(
                num_scalar_prefetch=0,
                grid=grid,
                in_specs=[pl.BlockSpec(block, idx)],
                out_specs=pl.BlockSpec(block, idx),
            ),
            compiler_params=pltpu.CompilerParams(
                dimension_semantics=("parallel", "parallel"),
                vmem_limit_bytes=_VMEM_LIMIT_BYTES,
            ),
            cost_estimate=pl.CostEstimate(
                flops=0,
                transcendentals=0,
                bytes_accessed=2 * R * T_out * itemsize,
            ),
        )(x2)
        return out2.reshape(B, C, T_out)

    # --- Small-shape fallback (T_out < 128): row-tiled full-T slabs. ---
    # TODO(synk): at this size plain XLA x[..., :T_out] is at least as fast;
    # kept in Pallas so the module always runs through the kernel path.
    r_tile = _row_tile(R, max(T, _LANE), x.dtype)
    out2 = pl.pallas_call(
        _slice_kernel,
        out_shape=jax.ShapeDtypeStruct((R, T_out), x.dtype),
        grid_spec=pltpu.PrefetchScalarGridSpec(
            num_scalar_prefetch=0,
            grid=(pl.cdiv(R, r_tile),),
            in_specs=[pl.BlockSpec((r_tile, T), lambda r: (r, 0))],
            out_specs=pl.BlockSpec((r_tile, T_out), lambda r: (r, 0)),
        ),
        compiler_params=pltpu.CompilerParams(
            dimension_semantics=("parallel",)
        ),
        cost_estimate=pl.CostEstimate(
            flops=0,
            transcendentals=0,
            bytes_accessed=R * (T + T_out) * itemsize,
        ),
    )(x2)
    return out2.reshape(B, C, T_out)


if __name__ == "__main__":
    key = jax.random.PRNGKey(0)

    # (shape, chop_size, dtype) cases:
    #   tiny             -> small fallback path (matches module-scale test)
    #   lane-aligned     -> tiled fast path, T_out = 1024
    #   unaligned        -> tiled path with a partial (masked) final time tile
    #   bf16, small-C    -> exercises B*C fold + 16-row sublane rounding
    cases = [
        ((2, 4, 16), 3, jnp.float32),
        ((2, 16, 1152), 128, jnp.float32),
        ((1, 8, 300), 7, jnp.float32),
        ((2, 48, 2048), 256, jnp.bfloat16),
    ]
    keys = jax.random.split(key, len(cases))
    for (shape, chop, dt), k in zip(cases, keys):
        x = jax.random.normal(k, shape, dtype=jnp.float32).astype(dt)
        out = chop1d(x, chop)
        jax.block_until_ready(out)
        ref = x[..., :-chop]
        assert out.shape == ref.shape, (out.shape, ref.shape)
        assert out.dtype == x.dtype
        assert jnp.array_equal(out, ref), f"mismatch for shape={shape}, chop={chop}"

    print("KERNEL_OK")
</pallas_src>

<mosaic_0001>
module attributes {stable_mosaic.version = 11 : i64} {
  func.func @_slice_kernel(%arg0: i32, %arg1: memref<8x16xf32, #tpu.memory_space<vmem>>, %arg2: memref<8x13xf32, #tpu.memory_space<vmem>>) attributes {dimension_semantics = [#tpu.dimension_semantics<parallel>], iteration_bounds = array<i64: 1>, scalar_prefetch = 0 : i64, scratch_operands = 0 : i64, tpu.core_type = #tpu.core_type<tc>, window_params = [{transform_indices = @transform_0, window_bounds = array<i64: 8, 16>}, {transform_indices = @transform_1, window_bounds = array<i64: 8, 13>}]} {
    %c0 = arith.constant 0 : index
    %c0_0 = arith.constant 0 : index
    %0 = vector.load %arg1[%c0, %c0_0] : memref<8x16xf32, #tpu.memory_space<vmem>>, vector<8x13xf32>
    %c0_1 = arith.constant 0 : index
    %c0_2 = arith.constant 0 : index
    %1 = vector.load %arg2[%c0_1, %c0_2] : memref<8x13xf32, #tpu.memory_space<vmem>>, vector<8x13xf32>
    tpu.vector_store %arg2[%c0_1, %c0_2], %0 {strides = array<i32>} : memref<8x13xf32, #tpu.memory_space<vmem>>, vector<8x13xf32>,
    return
  }
  func.func @transform_0(%arg0: i32) -> (i32, i32) {
    %c0_i32 = arith.constant 0 : i32
    %c0_i32_0 = arith.constant 0 : i32
    return %arg0, %c0_i32 : i32, i32
  }
  func.func @transform_1(%arg0: i32) -> (i32, i32) {
    %c0_i32 = arith.constant 0 : i32
    %c0_i32_0 = arith.constant 0 : i32
    return %arg0, %c0_i32 : i32, i32
  }
}

</mosaic_0001>

<bundles_post_ra>
// kernel: tpu_custom_call.1
= control target key start
LH: loop header
LB: loop body
LE: loop exit
PB: predicated region body
PF: predicated region fallthrough
CT: control target
= control target key end

     0   :  { %6 = vsyncpa [#allocation3], 0  ;;  %s115_s0 = inlined_call_operand.hbm [shape: f32[8,16], index: 0, kind: input, shape index: {}]   ;;  %s116_s1 = inlined_call_operand.hbm [shape: f32[8,13], index: 1, kind: output, shape index: {}]  }
   0x1   :  { %7 = vsyncpa [#allocation4], 0  ;;  %s13_s8 = sshll.u32 %s115_s0, 4  ;;  %s97_s9 = smov [#allocation2]   ;;  %s14_s8 = int_to_ptr.hbm [resolvable:$true] %s13_s8 }
   0x2   :  { %s15_s10 = sshll.u32 %s97_s9, 4  ;;  %s16_s10 = int_to_ptr.vmem [resolvable:$true] %s15_s10 }
   0x3   :  { %18 = dma.hbm_to_vmem [thread:$0]  %s14_s8, 128, %s16_s10, [#allocation3]  }
   0x4   :  { %93 = dma.done.wait [#allocation3], 128  }
   0x5   :  { %94 = vsyncadd [#allocation3], 4294967168  ;;  %s98_s11 = smov [#allocation5]   ;;  %s33_s15 = sshll.u32 %s116_s1, 4  ;;  %vm24_vm0 = vcmask 105472   ;;  %v23_v0 = vld [vmem:[#allocation2] sm:$0xff]  ;;  %s34_s15 = int_to_ptr.hbm [resolvable:$true] %s33_s15 }
   0x6   :  { %s31_s12 = sshll.u32 %s98_s11, 4  ;;  %25 = vst.msk [vmem:[#allocation5] sm:$0xff] %vm24_vm0, %v23_v0  ;;  %s32_s12 = int_to_ptr.vmem [resolvable:$true] %s31_s12 }
   0x7   :  { %36 = dma.vmem_to_hbm [thread:$0]  %s32_s12, 128, %s34_s15, [#allocation4]  }
   0x8   :  { %95 = dma.done.wait [#allocation4], 128  }
   0x9   :  { %96 = vsyncadd [#allocation4], 4294967168 }
   0xa   :  { %41 = vsyncpa [#allocation3], 1 }
   0xb   :  { %42 = vsyncpa [#allocation4], 1 }

</bundles_post_ra>
